<compile_context>
chip_gen: v6e
topology: v6e:2x2x1
jax: 0.10.0
libtpu: 0.0.40
codegen_flags: <defaults>
</compile_context>

<pallas_src>
import math
import jax
import jax.numpy as jnp
from jax.experimental import pallas as pl
from jax.experimental.pallas import tpu as pltpu


LANE = 128  # keep the stored output lane-dense


def _round_up(x, m):
    return ((x + m - 1) // m) * m


def _make_fused_mlp_kernel(num_layers):
    """Builds a kernel that runs the whole MLP on one batch tile."""

    def kernel(alphas_ref, x_ref, *rest):
        # rest = (w0, s0, w1, s1, ..., o_ref)
        o_ref = rest[-1]
        layer_refs = rest[:-1]

        # f32 input tile -> bf16 on the VPU (free; avoids a wrapper XLA pass).
        h = x_ref[...].astype(jnp.bfloat16)  # [TB, D_in]
        for l in range(num_layers):  # unrolled at trace time (static tiny dims)
            w_ref = layer_refs[2 * l]      # bf16 [D_in_l, D_out_l] = (scale ⊙ W)^T
            s_ref = layer_refs[2 * l + 1]  # f32  [1, D_out_l]      = folded BN shift

            # MXU matmul, f32 accumulation.
            y = jnp.dot(h, w_ref[...], preferred_element_type=jnp.float32)
            # BatchNorm (eval): scale already folded into the weights.
            y = y + s_ref[...]
            # PReLU slope from SMEM (scalar path, no vector DMA). f32 VPU math.
            a = alphas_ref[l]
            y = jnp.where(y >= 0.0, y, a * y)
            # Dropout: identity in eval mode.
            if l < num_layers - 1:
                h = y.astype(jnp.bfloat16)  # next MXU matmul in bf16
            else:
                h = y
        o_ref[...] = h.astype(o_ref.dtype)

    return kernel


def _auto_tb(B):
    # ~2 grid steps: amortizes per-step fixed cost (v5e/v6e) yet keeps >=2
    # parallel steps for v7x's two TensorCores. Multiple of 16 satisfies
    # sublane constraints for both f32 input and bf16 intermediates.
    half = _round_up(pl.cdiv(max(B, 1), 2), 16)
    return max(16, min(half, 1024))


def mlp_forward(x, params, alphas, *, tb=None, out_features=None,
                return_padded=False):
    """x: [B, D_in] float32. Returns [B, out_features] float32
    (or the full [B, lane-padded] slab if return_padded=True)."""
    B, d_in = x.shape
    num_layers = len(params)
    d_store = params[-1]["w_t"].shape[1]  # lane-padded final width

    if tb is None:
        tb = _auto_tb(B)
    grid = (pl.cdiv(B, tb),)   # ragged last tile handled by Pallas masking

    in_specs = [
        pl.BlockSpec(memory_space=pltpu.MemorySpace.SMEM),   # PReLU slopes
        pl.BlockSpec((tb, d_in), lambda i: (i, 0)),          # batch tile of x (f32)
    ]
    args = [alphas, x]
    for p in params:
        di, do = p["w_t"].shape
        # Weights & shifts: same block every grid step -> stay VMEM-resident.
        # (If tb ever grows huge, mark these pipeline_mode=pl.Buffered(1).)
        in_specs.append(pl.BlockSpec((di, do), lambda i: (0, 0)))
        in_specs.append(pl.BlockSpec((1, do), lambda i: (0, 0)))
        args.append(p["w_t"])
        args.append(p["shift"])

    flops = 2 * B * sum(p["w_t"].shape[0] * p["w_t"].shape[1] for p in params)
    bytes_accessed = (
        B * d_in * 4 + B * d_store * 4
        + sum(p["w_t"].size * 2 + p["shift"].size * 4 for p in params)
        + alphas.size * 4)

    out = pl.pallas_call(
        _make_fused_mlp_kernel(num_layers),
        out_shape=jax.ShapeDtypeStruct((B, d_store), jnp.float32),
        grid=grid,
        in_specs=in_specs,
        out_specs=pl.BlockSpec((tb, d_store), lambda i: (i, 0)),
        compiler_params=pltpu.CompilerParams(
            dimension_semantics=("parallel",)),
        cost_estimate=pl.CostEstimate(
            flops=flops, bytes_accessed=bytes_accessed, transcendentals=0),
    )(*args)

    if return_padded:
        return out  # downstream consumes the lane-padded slab; no extra copy
    if out_features is None:
        out_features = d_store
    if out_features == d_store:
        return out
    return out[:, :out_features]


def init_params(key, input_dim, embed_dims, eps=1e-5):
    """Deterministic parameters matching the PyTorch module's __init__,
    with eval-mode BatchNorm folded in and the final layer lane-padded."""
    params = []
    alphas = []
    d_in = input_dim
    n = len(embed_dims)
    for idx, d_out in enumerate(embed_dims):
        key, sub = jax.random.split(key)
        # xavier_uniform_ on weight of shape [d_out, d_in]
        bound = math.sqrt(6.0 / (d_in + d_out))
        w = jax.random.uniform(sub, (d_out, d_in), jnp.float32, -bound, bound)
        # Fresh BatchNorm1d buffers/affine params.
        gamma = jnp.ones((d_out,), jnp.float32)
        beta = jnp.zeros((d_out,), jnp.float32)
        running_mean = jnp.zeros((d_out,), jnp.float32)
        running_var = jnp.ones((d_out,), jnp.float32)
        scale = gamma / jnp.sqrt(running_var + eps)
        shift = beta - running_mean * scale
        # Fold the BN scale into the weights; keep only the additive shift.
        w_t = (w * scale[:, None]).T  # [d_in, d_out]
        # Lane-pad the FINAL layer to a multiple of 128 so the only HBM store
        # is lane-dense; zero weight columns -> zero outputs, sliced in wrapper.
        d_store = _round_up(d_out, LANE) if idx == n - 1 else d_out
        if d_store != d_out:
            w_t = jnp.pad(w_t, ((0, 0), (0, d_store - d_out)))
            shift = jnp.pad(shift, (0, d_store - d_out))
        params.append(dict(
            w_t=w_t.astype(jnp.bfloat16),                       # bf16 weights
            shift=shift.reshape(1, d_store).astype(jnp.float32),
        ))
        alphas.append(0.25)  # PReLU default init (shared single slope)
        d_in = d_out
    return params, jnp.asarray(alphas, jnp.float32)


def mlp_forward_ref(x, params, alphas, out_features):
    """Pure-JAX reference with identical precision choices."""
    h = x.astype(jnp.bfloat16)
    n = len(params)
    for l, p in enumerate(params):
        y = jnp.dot(h, p["w_t"], preferred_element_type=jnp.float32)
        y = y + p["shift"]
        a = alphas[l]
        y = jnp.where(y >= 0.0, y, a * y)
        h = y.astype(jnp.bfloat16) if l < n - 1 else y
    return h[:, :out_features]


if __name__ == "__main__":
    key = jax.random.PRNGKey(0)
    B, input_dim = 256, 32
    embed_dims = [32, 16]

    key, kx = jax.random.split(key)
    x = jax.random.normal(kx, (B, input_dim), jnp.float32)

    params, alphas = init_params(key, input_dim, embed_dims)

    out = mlp_forward(x, params, alphas, out_features=embed_dims[-1])
    out = jax.block_until_ready(out)

    ref = mlp_forward_ref(x, params, alphas, embed_dims[-1])
    assert out.shape == (B, embed_dims[-1])
    assert jnp.allclose(out, ref, atol=1e-2, rtol=1e-2), "mismatch vs JAX reference"

    print("KERNEL_OK")
</pallas_src>

<mosaic_0001>
module attributes {stable_mosaic.version = 11 : i64} {
  func.func @kernel(%arg0: i32, %arg1: memref<2xf32, #tpu.memory_space<smem>>, %arg2: memref<128x32xf32, #tpu.memory_space<vmem>>, %arg3: memref<32x32xbf16, #tpu.memory_space<vmem>>, %arg4: memref<1x32xf32, #tpu.memory_space<vmem>>, %arg5: memref<32x128xbf16, #tpu.memory_space<vmem>>, %arg6: memref<1x128xf32, #tpu.memory_space<vmem>>, %arg7: memref<128x128xf32, #tpu.memory_space<vmem>>) attributes {dimension_semantics = [#tpu.dimension_semantics<parallel>], iteration_bounds = array<i64: 2>, scalar_prefetch = 0 : i64, scratch_operands = 0 : i64, tpu.core_type = #tpu.core_type<tc>, window_params = [{transform_indices = @transform_0, window_bounds = array<i64: 2>}, {transform_indices = @transform_1, window_bounds = array<i64: 128, 32>}, {pipeline_mode = #tpu.pipeline_mode<synchronous>, transform_indices = @transform_2, window_bounds = array<i64: 32, 32>}, {pipeline_mode = #tpu.pipeline_mode<synchronous>, transform_indices = @transform_3, window_bounds = array<i64: 1, 32>}, {pipeline_mode = #tpu.pipeline_mode<synchronous>, transform_indices = @transform_4, window_bounds = array<i64: 32, 128>}, {pipeline_mode = #tpu.pipeline_mode<synchronous>, transform_indices = @transform_5, window_bounds = array<i64: 1, 128>}, {transform_indices = @transform_6, window_bounds = array<i64: 128, 128>}]} {
    %c0 = arith.constant 0 : index
    %c0_0 = arith.constant 0 : index
    %0 = vector.load %arg2[%c0, %c0_0] : memref<128x32xf32, #tpu.memory_space<vmem>>, vector<128x32xf32>
    %1 = arith.truncf %0 : vector<128x32xf32> to vector<128x32xbf16>
    %c0_1 = arith.constant 0 : index
    %c0_2 = arith.constant 0 : index
    %2 = vector.load %arg3[%c0_1, %c0_2] : memref<32x32xbf16, #tpu.memory_space<vmem>>, vector<32x32xbf16>
    %cst = arith.constant dense<0.000000e+00> : vector<128x32xf32>
    %3 = tpu.matmul %1, %2, %cst {dimension_numbers = #tpu.dot_dimension_numbers<[1], [0], [0], [1], [0, 0, 1, 1], [], []>} : vector<128x32xbf16>, vector<32x32xbf16>, vector<128x32xf32> -> vector<128x32xf32>
    %c0_3 = arith.constant 0 : index
    %c0_4 = arith.constant 0 : index
    %4 = vector.load %arg4[%c0_3, %c0_4] : memref<1x32xf32, #tpu.memory_space<vmem>>, vector<1x32xf32>
    %5 = vector.broadcast %4 : vector<1x32xf32> to vector<128x32xf32>
    %6 = arith.addf %3, %5 : vector<128x32xf32>
    %c0_5 = arith.constant 0 : index
    %7 = memref.load %arg1[%c0_5] : memref<2xf32, #tpu.memory_space<smem>>
    %cst_6 = arith.constant 0.000000e+00 : f32
    %8 = vector.broadcast %cst_6 : f32 to vector<128x32xf32>
    %9 = arith.cmpf oge, %6, %8 : vector<128x32xf32>
    %10 = vector.broadcast %7 : f32 to vector<128x32xf32>
    %11 = arith.mulf %10, %6 : vector<128x32xf32>
    %12 = arith.select %9, %6, %11 : vector<128x32xi1>, vector<128x32xf32>
    %13 = arith.truncf %12 : vector<128x32xf32> to vector<128x32xbf16>
    %c0_7 = arith.constant 0 : index
    %c0_8 = arith.constant 0 : index
    %14 = vector.load %arg5[%c0_7, %c0_8] : memref<32x128xbf16, #tpu.memory_space<vmem>>, vector<32x128xbf16>
    %cst_9 = arith.constant dense<0.000000e+00> : vector<128x128xf32>
    %15 = tpu.matmul %13, %14, %cst_9 {dimension_numbers = #tpu.dot_dimension_numbers<[1], [0], [0], [1], [0, 0, 1, 1], [], []>} : vector<128x32xbf16>, vector<32x128xbf16>, vector<128x128xf32> -> vector<128x128xf32>
    %c0_10 = arith.constant 0 : index
    %c0_11 = arith.constant 0 : index
    %16 = vector.load %arg6[%c0_10, %c0_11] : memref<1x128xf32, #tpu.memory_space<vmem>>, vector<1x128xf32>
    %17 = vector.broadcast %16 : vector<1x128xf32> to vector<128x128xf32>
    %18 = arith.addf %15, %17 : vector<128x128xf32>
    %c1 = arith.constant 1 : index
    %19 = memref.load %arg1[%c1] : memref<2xf32, #tpu.memory_space<smem>>
    %cst_12 = arith.constant 0.000000e+00 : f32
    %20 = vector.broadcast %cst_12 : f32 to vector<128x128xf32>
    %21 = arith.cmpf oge, %18, %20 : vector<128x128xf32>
    %22 = vector.broadcast %19 : f32 to vector<128x128xf32>
    %23 = arith.mulf %22, %18 : vector<128x128xf32>
    %24 = arith.select %21, %18, %23 : vector<128x128xi1>, vector<128x128xf32>
    %c0_13 = arith.constant 0 : index
    %c0_14 = arith.constant 0 : index
    %25 = vector.load %arg7[%c0_13, %c0_14] : memref<128x128xf32, #tpu.memory_space<vmem>>, vector<128x128xf32>
    tpu.vector_store %arg7[%c0_13, %c0_14], %24 {strides = array<i32>} : memref<128x128xf32, #tpu.memory_space<vmem>>, vector<128x128xf32>,
    return
  }
  func.func @transform_0(%arg0: i32) -> i32 {
    %c0_i32 = arith.constant 0 : i32
    %c0_i32_0 = arith.constant 0 : i32
    return %c0_i32 : i32
  }
  func.func @transform_1(%arg0: i32) -> (i32, i32) {
    %c0_i32 = arith.constant 0 : i32
    %c0_i32_0 = arith.constant 0 : i32
    return %arg0, %c0_i32 : i32, i32
  }
  func.func @transform_2(%arg0: i32) -> (i32, i32) {
    %c0_i32 = arith.constant 0 : i32
    %c0_i32_0 = arith.constant 0 : i32
    %c0_i32_1 = arith.constant 0 : i32
    return %c0_i32, %c0_i32_0 : i32, i32
  }
  func.func @transform_3(%arg0: i32) -> (i32, i32) {
    %c0_i32 = arith.constant 0 : i32
    %c0_i32_0 = arith.constant 0 : i32
    %c0_i32_1 = arith.constant 0 : i32
    return %c0_i32, %c0_i32_0 : i32, i32
  }
  func.func @transform_4(%arg0: i32) -> (i32, i32) {
    %c0_i32 = arith.constant 0 : i32
    %c0_i32_0 = arith.constant 0 : i32
    %c0_i32_1 = arith.constant 0 : i32
    return %c0_i32, %c0_i32_0 : i32, i32
  }
  func.func @transform_5(%arg0: i32) -> (i32, i32) {
    %c0_i32 = arith.constant 0 : i32
    %c0_i32_0 = arith.constant 0 : i32
    %c0_i32_1 = arith.constant 0 : i32
    return %c0_i32, %c0_i32_0 : i32, i32
  }
  func.func @transform_6(%arg0: i32) -> (i32, i32) {
    %c0_i32 = arith.constant 0 : i32
    %c0_i32_0 = arith.constant 0 : i32
    return %arg0, %c0_i32 : i32, i32
  }
}

</mosaic_0001>

<bundles_post_ra>
// kernel: tpu_custom_call.1
= control target key start
LH: loop header
LB: loop body
LE: loop exit
PB: predicated region body
PF: predicated region fallthrough
CT: control target
= control target key end

     0   :  { %11 = vsyncpa [#allocation4], 0  ;;  %s1333_s0 = inlined_call_operand.vmem [shape: f32[2], index: 0, kind: input, shape index: {}]   ;;  %s1334_s1 = inlined_call_operand.vmem [shape: f32[256,32], index: 1, kind: input, shape index: {}]   ;;  %s1335_s2 = inlined_call_operand.vmem [shape: bf16[32,32], index: 2, kind: input, shape index: {}]   ;;  %s1336_s3 = inlined_call_operand.vmem [shape: f32[1,32], index: 3, kind: input, shape index: {}]   ;;  %s1337_s4 = inlined_call_operand.vmem [shape: bf16[32,128], index: 4, kind: input, shape index: {}]   ;;  %s1338_s5 = inlined_call_operand.vmem [shape: f32[1,128], index: 5, kind: input, shape index: {}]   ;;  %s1339_s6 = inlined_call_operand.hbm [shape: f32[256,128], index: 6, kind: output, shape index: {}]  }
   0x1   :  { %12 = vsyncpa [#allocation3], 0 }
   0x2   :  { %14 = vsyncpa [#allocation3 + $0x1], 0  ;;  %s1067_s21 = smov 0   ;;  %s1069_s22 = smov 0  }
   0x3   :  { %s1071_s23 = smov 0   ;;  %s1073_s24 = smov 0  }
   0x4 LB: > { %s1088_s25 = sadd.s32 4294967295, %s1026_s24   ;;  %s793_s26 = sadd.s32 4294967294, %s1026_s24   ;;  %s1026_s24 = sphi %s1073_s24, %s1346_s24   ;;  %s1022_s23 = sphi %s1071_s23, %s1345_s23   ;;  %s1018_s22 = sphi %s1069_s22, %s1344_s22   ;;  %s1014_s21 = sphi %s1067_s21, %s1343_s21  }
   0x5   : > { %s1092_s27 = sadd.s32 1, %s1026_s24   ;;  %s158_s28 = sadd.s32 1, %s1022_s23 }
   0x6   : > { %s155_s29 = ssub.s32 %s1026_s24, %s1092_s27  ;;  %p168_p0 = scmp.ne.s32.totalorder %s1022_s23, %s1018_s22 }
   0x7   : > { %p156_p1 = scmp.eq.s32.totalorder %s155_s29, 0  ;;  %p169_p2 = scmp.eq.s32.totalorder %s1088_s25, 1 }
   0x8   : > { %p174_p3 = scmp.ne.s32.totalorder %s1018_s22, %s1014_s21  ;;  %p175_p4 = scmp.eq.s32.totalorder %s793_s26, 1 }
   0x9   : > { %s1103_s30 = scalar_select %p156_p1, %s1022_s23, %s158_s28  }
   0xa   : > { %p1105_p5 = por %p169_p2, %p168_p0  ;;  %p1109_p6 = por %p175_p4, %p174_p3 }
   0xb   : > { %p794_p7 = scmp.ge.s32.totalorder %s1026_s24, 1  ;;  %p182_p8 = scmp.lt.s32.totalorder %s1026_s24, 3 }
   0xc   : > { %p905_p9 = scmp.eq.s32.totalorder %s1088_s25, 0  ;;  %s195_s12 = sshll.u32 %s1333_s0, 4  ;;  %s196_s12 = int_to_ptr.vmem [resolvable:$true] %s195_s12 }
   0xd   : > { %p1116_p10 = pnand %p794_p7, %p182_p8  ;;  %s947_s13 = scalar_lea.vmem %s196_s12, 16 }
   0xe   : > { %p948_p13 = scmp.ne.s32.totalorder %s196_s12, %s947_s13  ;;  %p955_p3 = scmp.lt.s32.totalorder %s196_s12, %s196_s12 }
   0xf   : > { %p897_p11 = pneg %p1116_p10  ;;  %p956_p4 = scmp.lt.s32.totalorder %s947_s13, %s947_s13 }
  0x11   : > { %p898_p12 = pnand %p905_p9, %p897_p11  ;;  %p957_p7 = por %p956_p4, %p955_p3 }
  0x13   : > { %p949_p0 = pneg %p898_p12 }
  0x15   : > { %p950_p1 = pnand %p949_p0, %p948_p13 }
  0x17   : > { %p951_p2 = pneg %p950_p1 }
  0x19   : > { %p958_p8 = pnand %p957_p7, %p951_p2 }
  0x1b   : > { %961 = shalt.err (!%p958_p8)
}
  0x1c   : > { %s1028_s14 = smov [#allocation2]   ;;  %229 = sbr.rel (%p1116_p10) target bundleno = 495 (0x1ef), region = 44 }
  0x1d   : > { %900 = dma.vmem_to_smem (!%p898_p12), %s196_s12, 16, %s1028_s14, [#allocation4]  }
  0x21   : > { %1005 = dma.done.wait (%p905_p9), [#allocation4], 16  }
  0x22   : > { %1007 = vsyncadd (%p905_p9), [#allocation4], 4294967280 }
  0x23   : > { %235 = sfence }
  0x24   : > { %v943_v0 = vld [vmem:[%s1335_s2 + $0x8] sm:$0xff]   ;;  %s800_s17 = sshll.u32 %s1088_s25, 4  ;;  %v944_v1 = vld [vmem:[%s1335_s2] sm:$0xff]   ;;  %vm315_vm0 = vcmask 261120   ;;  %s437_s13 = sld [smem:[#allocation2]] }
  0x25   : > { %p261_p11 = scmp.lt.s32.totalorder %s800_s17, 31  ;;  %851 = vmatprep.subr.bf16.mxu0 %v943_v0  ;;  %v945_v26 = vld [vmem:[%s1337_s4 + $0x8] sm:$0xff]   ;;  %v946_v27 = vld [vmem:[%s1337_s4] sm:$0xff]   ;;  %s824_s16 = sld [smem:[#allocation2 + $0x1]] }
  0x26   : > { %852 = vmatpush3.bf16.msra.mxu0 %v943_v0  ;;  %871 = vmatprep.subr.bf16.mxu1 %v945_v26  ;;  %v1178_v29 = vld [vmem:[%s1336_s3] ss:$0 sm:$0xff]  ;;  %s830_s28 = sshll.u32 %s1088_s25, 11 }
  0x27   : > { %s1348_s17 = smov (!%p261_p11, %s800_s17), 31  ;;  %853 = vmatprep.subr.bf16.mxu0 %v944_v1  ;;  %872 = vmatpush3.bf16.msra.mxu1 %v945_v26  ;;  %s1285_s11 = scalar_lea.hbm %s1339_s6, %s830_s28 }
  0x28   : > { %s801_s20 = sshll.u32 %s1348_s17, 3  ;;  %873 = vmatprep.subr.bf16.mxu1 %v946_v27  ;;  %s257_s17 = sand.u32 1, %s1018_s22  }
  0x29   : > { %s1143_s29 = scalar_lea.vmem %s1334_s1, %s801_s20  ;;  %s799_s20 = sshll.u32 %s257_s17, 7 }
  0x2a   : > { %854 = vmatpush3.bf16.msra.mxu0 %v944_v1  ;;  %v268_v2 = vld [vmem:[%s1143_s29] sm:$0xff]  ;;  %v269_v3 = vld [vmem:[%s1143_s29 + $0x8] sm:$0xff]  ;;  %v270_v4 = vld [vmem:[%s1143_s29 + $0x10] sm:$0xff]  ;;  %v1182_v34 = vstv %s437_s13  ;;  %s1237_s26 = scalar_lea.vmem [#allocation5], %s799_s20  ;;  %s1293_s25 = scalar_lea.sflag [#allocation3], %s257_s17 }
  0x2b   : > { %v284_v5 = vpack.c.bf16 %v269_v3, %v268_v2  ;;  %v271_v6 = vld [vmem:[%s1143_s29 + $0x18] sm:$0xff]  ;;  %v272_v7 = vld [vmem:[%s1143_s29 + $0x20] sm:$0xff]  ;;  %v273_v8 = vld [vmem:[%s1143_s29 + $0x28] sm:$0xff]  ;;  %874 = vmatpush3.bf16.msra.mxu1 %v946_v27  ;;  %s1029_s13 = smov [#allocation5]  }
  0x2c   : > { %v285_v9 = vpack.c.bf16 %v271_v6, %v270_v4  ;;  %v286_v10 = vpack.c.bf16 %v273_v8, %v272_v7  ;;  %v274_v11 = vld [vmem:[%s1143_s29 + $0x30] sm:$0xff]  ;;  %v275_v12 = vld [vmem:[%s1143_s29 + $0x38] sm:$0xff]  ;;  %v276_v13 = vld [vmem:[%s1143_s29 + $0x40] sm:$0xff]  ;;  %s966_s14 = sshll.u32 %s1029_s13, 4  ;;  %s967_s14 = int_to_ptr.vmem [resolvable:$false] %s966_s14 }
  0x2d   : > { %855 = vmatprep.mubr.msk.bf16.mxu0 %vm315_vm0, %v284_v5  ;;  %v277_v14 = vld [vmem:[%s1143_s29 + $0x48] sm:$0xff]  ;;  %v287_v15 = vpack.c.bf16 %v275_v12, %v274_v11  ;;  %v278_v17 = vld [vmem:[%s1143_s29 + $0x50] sm:$0xff]  ;;  %v279_v18 = vld [vmem:[%s1143_s29 + $0x58] sm:$0xff]  ;;  %s968_s15 = scalar_lea.vmem %s967_s14, 4096 }
  0x2e   : > { %856 = vmatmul.mubr.msk.bf16.vlgmr.msra.gmra.mxu0 %vm315_vm0, %v285_v9  ;;  %v288_v16 = vpack.c.bf16 %v277_v14, %v276_v13  ;;  %v280_v19 = vld [vmem:[%s1143_s29 + $0x60] sm:$0xff]  ;;  %v281_v20 = vld [vmem:[%s1143_s29 + $0x68] sm:$0xff]  ;;  %v289_v21 = vpack.c.bf16 %v279_v18, %v278_v17  ;;  %v282_v23 = vld [vmem:[%s1143_s29 + $0x70] sm:$0xff] }
  0x2f   : > { %859 = vmatprep.mubr.msk.bf16.mxu0 %vm315_vm0, %v286_v10  ;;  %v290_v22 = vpack.c.bf16 %v281_v20, %v280_v19  ;;  %v283_v24 = vld [vmem:[%s1143_s29 + $0x78] sm:$0xff]  ;;  %s719_s29 = sshll.u32 %s1237_s26, 4  ;;  %s1287_s29 = int_to_ptr.vmem [resolvable:$true] %s719_s29 }
  0x30   : > { %v291_v25 = vpack.c.bf16 %v283_v24, %v282_v23  ;;  %s962_s12 = scalar_lea.vmem %s1287_s29, 2048  ;;  %p969_p13 = scmp.lt.s32.totalorder %s1287_s29, %s967_s14 }
  0x31   : > { %p963_p9 = scmp.ne.s32.totalorder %s1287_s29, %s962_s12  ;;  %p970_p0 = scmp.lt.s32.totalorder %s968_s15, %s962_s12 }
  0x33   : > { %p964_p10 = pnand %p963_p9, %p1105_p5  ;;  %p971_p1 = por %p970_p0, %p969_p13 }
  0x35   : > { %p965_p12 = pneg %p964_p10 }
  0x36   : > { %860 = vmatmul.mubr.msk.bf16.gmra.mxu0 %vm315_vm0, %v287_v15 }
  0x37   : > { %863 = vmatprep.mubr.msk.bf16.mxu0 %vm315_vm0, %v288_v16  ;;  %p972_p2 = pnand %p971_p1, %p965_p12 }
  0x3e   : > { %864 = vmatmul.mubr.msk.bf16.gmra.mxu0 %vm315_vm0, %v289_v21 }
  0x3f   : > { %867 = vmatprep.mubr.msk.bf16.mxu0 %vm315_vm0, %v290_v22 }
  0x46   : > { %868 = vmatmul.mubr.msk.bf16.gmra.mxu0 %vm315_vm0, %v291_v25 }
  0xee   : > { %v857_v28 = vpop.f32.mrf.mxu0 }
  0xef   : > { %v383_v32 = vadd.f32 %v857_v28, %v1178_v29 }
  0xf0   : > { %v374_v30 = vpop.f32.mrf.mxu0 }
  0xf1   : > { %v375_v31 = vadd.f32 %v1178_v29, %v374_v30  ;;  %v457_v40 = vmul.f32 %v1182_v34, %v383_v32  ;;  %vm440_vm3 = vcmp.ge.f32.partialorder %v383_v32, 0.0 }
  0xf2   : > { %v858_v33 = vpop.f32.mrf.mxu0 }
  0xf3   : > { %v386_v35 = vadd.f32 %v858_v33, %v1178_v29  ;;  %v455_v37 = vmul.f32 %v1182_v34, %v375_v31  ;;  %vm438_vm2 = vcmp.ge.f32.partialorder %v375_v31, 0.0  ;;  %v473_v48 = vsel %vm440_vm3, %v383_v32, %v457_v40 }
  0xf4   : > { %v377_v36 = vpop.f32.mrf.mxu0  ;;  %v1230_v40 = vstv %s824_s16 }
  0xf5   : > { %vm441_vm1 = vcmp.ge.f32.partialorder %v386_v35, 0.0  ;;  %v458_v38 = vmul.f32 %v1182_v34, %v386_v35  ;;  %v378_v39 = vadd.f32 %v1178_v29, %v377_v36  ;;  %v471_v46 = vsel %vm438_vm2, %v375_v31, %v455_v37 }
  0xf6   : > { %v861_v41 = vpop.f32.mrf.mxu0 }
  0xf7   : > { %v456_v42 = vmul.f32 %v1182_v34, %v378_v39  ;;  %vm439_vm4 = vcmp.ge.f32.partialorder %v378_v39, 0.0  ;;  %v474_v43 = vsel %vm441_vm1, %v386_v35, %v458_v38  ;;  %v399_v49 = vadd.f32 %v861_v41, %v1178_v29 }
  0xf8   : > { %v390_v44 = vpop.f32.mrf.mxu0  ;;  %v488_v52 = vpack.c.bf16 %v474_v43, %v473_v48 }
  0xf9   : > { %v391_v45 = vadd.f32 %v1178_v29, %v390_v44  ;;  %v472_v47 = vsel %vm439_vm4, %v378_v39, %v456_v42  ;;  %v461_v58 = vmul.f32 %v1182_v34, %v399_v49  ;;  %vm444_vm7 = vcmp.ge.f32.partialorder %v399_v49, 0.0 }
  0xfa   : > { %v862_v50 = vpop.f32.mrf.mxu0  ;;  %v487_v51 = vpack.c.bf16 %v472_v47, %v471_v46 }
  0xfb   : > { %v402_v53 = vadd.f32 %v862_v50, %v1178_v29  ;;  %v459_v55 = vmul.f32 %v1182_v34, %v391_v45  ;;  %vm442_vm6 = vcmp.ge.f32.partialorder %v391_v45, 0.0  ;;  %v477_v2 = vsel %vm444_vm7, %v399_v49, %v461_v58 }
  0xfc   : > { %v393_v54 = vpop.f32.mrf.mxu0  ;;  %875 = vmatprep.mubr.msk.bf16.mxu1 %vm315_vm0, %v487_v51 }
  0xfd   : > { %vm445_vm5 = vcmp.ge.f32.partialorder %v402_v53, 0.0  ;;  %v462_v56 = vmul.f32 %v1182_v34, %v402_v53  ;;  %v394_v57 = vadd.f32 %v1178_v29, %v393_v54  ;;  %876 = vmatmul.mubr.msk.bf16.vlgmr.msra.gmra.mxu1 %vm315_vm0, %v488_v52  ;;  %v475_v63 = vsel %vm442_vm6, %v391_v45, %v459_v55 }
  0xfe   : > { %v865_v59 = vpop.f32.mrf.mxu0 }
  0xff   : > { %vm443_vm8 = vcmp.ge.f32.partialorder %v394_v57, 0.0  ;;  %v460_v60 = vmul.f32 %v1182_v34, %v394_v57  ;;  %v478_v61 = vsel %vm445_vm5, %v402_v53, %v462_v56  ;;  %v415_v4 = vadd.f32 %v865_v59, %v1178_v29 }
 0x100   : > { %v406_v62 = vpop.f32.mrf.mxu0  ;;  %v490_v6 = vpack.c.bf16 %v478_v61, %v477_v2 }
 0x101   : > { %v476_v0 = vsel %vm443_vm8, %v394_v57, %v460_v60  ;;  %v407_v1 = vadd.f32 %v1178_v29, %v406_v62  ;;  %v465_v12 = vmul.f32 %v1182_v34, %v415_v4  ;;  %vm448_vm11 = vcmp.ge.f32.partialorder %v415_v4, 0.0 }
 0x102   : > { %v489_v3 = vpack.c.bf16 %v476_v0, %v475_v63  ;;  %v866_v5 = vpop.f32.mrf.mxu0 }
 0x103   : > { %v418_v7 = vadd.f32 %v866_v5, %v1178_v29  ;;  %v463_v9 = vmul.f32 %v1182_v34, %v407_v1  ;;  %vm446_vm10 = vcmp.ge.f32.partialorder %v407_v1, 0.0  ;;  %v481_v20 = vsel %vm448_vm11, %v415_v4, %v465_v12 }
 0x104   : > { %v409_v8 = vpop.f32.mrf.mxu0  ;;  %879 = vmatprep.mubr.msk.bf16.mxu1 %vm315_vm0, %v489_v3 }
 0x105   : > { %vm449_vm9 = vcmp.ge.f32.partialorder %v418_v7, 0.0  ;;  %v466_v10 = vmul.f32 %v1182_v34, %v418_v7  ;;  %v410_v11 = vadd.f32 %v1178_v29, %v409_v8  ;;  %880 = vmatmul.mubr.msk.bf16.gmra.mxu1 %vm315_vm0, %v490_v6  ;;  %v479_v17 = vsel %vm446_vm10, %v407_v1, %v463_v9 }
 0x106   : > { %v869_v13 = vpop.f32.mrf.mxu0 }
 0x107   : > { %vm447_vm12 = vcmp.ge.f32.partialorder %v410_v11, 0.0  ;;  %v464_v14 = vmul.f32 %v1182_v34, %v410_v11  ;;  %v482_v15 = vsel %vm449_vm9, %v418_v7, %v466_v10  ;;  %v431_v22 = vadd.f32 %v869_v13, %v1178_v29 }
 0x108   : > { %v422_v16 = vpop.f32.mrf.mxu0  ;;  %v492_v24 = vpack.c.bf16 %v482_v15, %v481_v20 }
 0x109   : > { %v480_v18 = vsel %vm447_vm12, %v410_v11, %v464_v14  ;;  %v423_v19 = vadd.f32 %v1178_v29, %v422_v16  ;;  %v469_v31 = vmul.f32 %v1182_v34, %v431_v22  ;;  %vm452_vm15 = vcmp.ge.f32.partialorder %v431_v22, 0.0 }
 0x10a   : > { %v491_v21 = vpack.c.bf16 %v480_v18, %v479_v17  ;;  %v870_v23 = vpop.f32.mrf.mxu0 }
 0x10b   : > { %v434_v25 = vadd.f32 %v870_v23, %v1178_v29  ;;  %v467_v27 = vmul.f32 %v1182_v34, %v423_v19  ;;  %vm450_vm14 = vcmp.ge.f32.partialorder %v423_v19, 0.0  ;;  %v485_v37 = vsel %vm452_vm15, %v431_v22, %v469_v31 }
 0x10c   : > { %v425_v26 = vpop.f32.mrf.mxu0  ;;  %883 = vmatprep.mubr.msk.bf16.mxu1 %vm315_vm0, %v491_v21 }
 0x10d   : > { %vm453_vm13 = vcmp.ge.f32.partialorder %v434_v25, 0.0  ;;  %v470_v28 = vmul.f32 %v1182_v34, %v434_v25  ;;  %v426_v30 = vadd.f32 %v1178_v29, %v425_v26  ;;  %884 = vmatmul.mubr.msk.bf16.gmra.mxu1 %vm315_vm0, %v492_v24  ;;  %v483_v35 = vsel %vm450_vm14, %v423_v19, %v467_v27  ;;  %v1226_v29 = vld [vmem:[%s1338_s5] ss:$0 sm:$0xff] }
 0x10f   : > { %vm451_vm1 = vcmp.ge.f32.partialorder %v426_v30, 0.0  ;;  %v468_v32 = vmul.f32 %v1182_v34, %v426_v30  ;;  %v486_v33 = vsel %vm453_vm13, %v434_v25, %v470_v28 }
 0x110   : > { %v494_v39 = vpack.c.bf16 %v486_v33, %v485_v37 }
 0x111   : > { %v484_v36 = vsel %vm451_vm1, %v426_v30, %v468_v32 }
 0x112   : > { %v493_v38 = vpack.c.bf16 %v484_v36, %v483_v35 }
 0x114   : > { %887 = vmatprep.mubr.msk.bf16.mxu1 %vm315_vm0, %v493_v38 }
 0x115   : > { %888 = vmatmul.mubr.msk.bf16.gmra.mxu1 %vm315_vm0, %v494_v39 }
 0x1bd   : > { %v877_v34 = vpop.f32.mrf.mxu1 }
 0x1be   : > { %v585_v41 = vadd.f32 %v877_v34, %v1226_v29 }
 0x1bf   : > { %v576_v42 = vpop.f32.mrf.mxu1 }
 0x1c0   : > { %vm642_vm2 = vcmp.ge.f32.partialorder %v585_v41, 0.0  ;;  %v659_v43 = vmul.f32 %v1230_v40, %v585_v41  ;;  %v577_v44 = vadd.f32 %v1226_v29, %v576_v42 }
 0x1c1   : > { %v878_v45 = vpop.f32.mrf.mxu1 }
 0x1c2   : > { %v675_v46 = vsel %vm642_vm2, %v585_v41, %v659_v43  ;;  %vm640_vm0 = vcmp.ge.f32.partialorder %v577_v44, 0.0  ;;  %v657_v47 = vmul.f32 %v1230_v40, %v577_v44  ;;  %v588_v48 = vadd.f32 %v878_v45, %v1226_v29 }
 0x1c3   : > { %691 = vst [vmem:[%s1237_s26 + $0x10] sm:$0xff] %v675_v46  ;;  %v579_v49 = vpop.f32.mrf.mxu1 }
 0x1c4   : > { %v673_v50 = vsel %vm640_vm0, %v577_v44, %v657_v47  ;;  %vm643_vm3 = vcmp.ge.f32.partialorder %v588_v48, 0.0  ;;  %v660_v51 = vmul.f32 %v1230_v40, %v588_v48  ;;  %v580_v52 = vadd.f32 %v1226_v29, %v579_v49 }
 0x1c5   : > { %689 = vst [vmem:[%s1237_s26] sm:$0xff] %v673_v50  ;;  %v881_v53 = vpop.f32.mrf.mxu1 }
 0x1c6   : > { %v676_v54 = vsel %vm643_vm3, %v588_v48, %v660_v51  ;;  %vm641_vm4 = vcmp.ge.f32.partialorder %v580_v52, 0.0  ;;  %v658_v55 = vmul.f32 %v1230_v40, %v580_v52  ;;  %v601_v56 = vadd.f32 %v881_v53, %v1226_v29 }
 0x1c7   : > { %692 = vst [vmem:[%s1237_s26 + $0x18] sm:$0xff] %v676_v54  ;;  %v592_v57 = vpop.f32.mrf.mxu1 }
 0x1c8   : > { %v674_v58 = vsel %vm641_vm4, %v580_v52, %v658_v55  ;;  %vm646_vm5 = vcmp.ge.f32.partialorder %v601_v56, 0.0  ;;  %v663_v59 = vmul.f32 %v1230_v40, %v601_v56  ;;  %v593_v60 = vadd.f32 %v1226_v29, %v592_v57 }
 0x1c9   : > { %690 = vst [vmem:[%s1237_s26 + $0x8] sm:$0xff] %v674_v58  ;;  %v882_v61 = vpop.f32.mrf.mxu1 }
 0x1ca   : > { %v679_v62 = vsel %vm646_vm5, %v601_v56, %v663_v59  ;;  %vm644_vm6 = vcmp.ge.f32.partialorder %v593_v60, 0.0  ;;  %v661_v63 = vmul.f32 %v1230_v40, %v593_v60  ;;  %v604_v0 = vadd.f32 %v882_v61, %v1226_v29 }
 0x1cb   : > { %695 = vst [vmem:[%s1237_s26 + $0x30] sm:$0xff] %v679_v62  ;;  %v595_v1 = vpop.f32.mrf.mxu1 }
 0x1cc   : > { %v677_v2 = vsel %vm644_vm6, %v593_v60, %v661_v63  ;;  %vm647_vm7 = vcmp.ge.f32.partialorder %v604_v0, 0.0  ;;  %v664_v3 = vmul.f32 %v1230_v40, %v604_v0  ;;  %v596_v4 = vadd.f32 %v1226_v29, %v595_v1 }
 0x1cd   : > { %693 = vst [vmem:[%s1237_s26 + $0x20] sm:$0xff] %v677_v2  ;;  %v885_v5 = vpop.f32.mrf.mxu1 }
 0x1ce   : > { %v680_v6 = vsel %vm647_vm7, %v604_v0, %v664_v3  ;;  %vm645_vm8 = vcmp.ge.f32.partialorder %v596_v4, 0.0  ;;  %v662_v7 = vmul.f32 %v1230_v40, %v596_v4  ;;  %v617_v8 = vadd.f32 %v885_v5, %v1226_v29 }
 0x1cf   : > { %696 = vst [vmem:[%s1237_s26 + $0x38] sm:$0xff] %v680_v6  ;;  %v608_v9 = vpop.f32.mrf.mxu1 }
 0x1d0   : > { %v678_v10 = vsel %vm645_vm8, %v596_v4, %v662_v7  ;;  %vm650_vm9 = vcmp.ge.f32.partialorder %v617_v8, 0.0  ;;  %v667_v11 = vmul.f32 %v1230_v40, %v617_v8  ;;  %v609_v12 = vadd.f32 %v1226_v29, %v608_v9 }
 0x1d1   : > { %694 = vst [vmem:[%s1237_s26 + $0x28] sm:$0xff] %v678_v10  ;;  %v886_v13 = vpop.f32.mrf.mxu1 }
 0x1d2   : > { %v683_v14 = vsel %vm650_vm9, %v617_v8, %v667_v11  ;;  %vm648_vm10 = vcmp.ge.f32.partialorder %v609_v12, 0.0  ;;  %v665_v15 = vmul.f32 %v1230_v40, %v609_v12  ;;  %v620_v16 = vadd.f32 %v886_v13, %v1226_v29 }
 0x1d3   : > { %699 = vst [vmem:[%s1237_s26 + $0x50] sm:$0xff] %v683_v14  ;;  %v611_v17 = vpop.f32.mrf.mxu1 }
 0x1d4   : > { %v681_v18 = vsel %vm648_vm10, %v609_v12, %v665_v15  ;;  %vm651_vm11 = vcmp.ge.f32.partialorder %v620_v16, 0.0  ;;  %v668_v19 = vmul.f32 %v1230_v40, %v620_v16  ;;  %v612_v20 = vadd.f32 %v1226_v29, %v611_v17 }
 0x1d5   : > { %697 = vst [vmem:[%s1237_s26 + $0x40] sm:$0xff] %v681_v18  ;;  %v889_v21 = vpop.f32.mrf.mxu1 }
 0x1d6   : > { %v684_v22 = vsel %vm651_vm11, %v620_v16, %v668_v19  ;;  %vm649_vm12 = vcmp.ge.f32.partialorder %v612_v20, 0.0  ;;  %v666_v23 = vmul.f32 %v1230_v40, %v612_v20  ;;  %v633_v24 = vadd.f32 %v889_v21, %v1226_v29 }
 0x1d7   : > { %700 = vst [vmem:[%s1237_s26 + $0x58] sm:$0xff] %v684_v22  ;;  %v624_v25 = vpop.f32.mrf.mxu1 }
 0x1d8   : > { %v682_v26 = vsel %vm649_vm12, %v612_v20, %v666_v23  ;;  %vm654_vm13 = vcmp.ge.f32.partialorder %v633_v24, 0.0  ;;  %v671_v27 = vmul.f32 %v1230_v40, %v633_v24  ;;  %v625_v28 = vadd.f32 %v1226_v29, %v624_v25 }
 0x1d9   : > { %698 = vst [vmem:[%s1237_s26 + $0x48] sm:$0xff] %v682_v26  ;;  %v890_v30 = vpop.f32.mrf.mxu1 }
 0x1da   : > { %v687_v31 = vsel %vm654_vm13, %v633_v24, %v671_v27  ;;  %vm652_vm14 = vcmp.ge.f32.partialorder %v625_v28, 0.0  ;;  %v669_v32 = vmul.f32 %v1230_v40, %v625_v28  ;;  %v636_v33 = vadd.f32 %v890_v30, %v1226_v29 }
 0x1db   : > { %703 = vst [vmem:[%s1237_s26 + $0x70] sm:$0xff] %v687_v31  ;;  %v627_v35 = vpop.f32.mrf.mxu1 }
 0x1dc   : > { %v685_v36 = vsel %vm652_vm14, %v625_v28, %v669_v32  ;;  %vm655_vm15 = vcmp.ge.f32.partialorder %v636_v33, 0.0  ;;  %v672_v37 = vmul.f32 %v1230_v40, %v636_v33  ;;  %v628_v38 = vadd.f32 %v1226_v29, %v627_v35 }
 0x1dd   : > { %701 = vst [vmem:[%s1237_s26 + $0x60] sm:$0xff] %v685_v36 }
 0x1de   : > { %v688_v39 = vsel %vm655_vm15, %v636_v33, %v672_v37  ;;  %vm653_vm1 = vcmp.ge.f32.partialorder %v628_v38, 0.0  ;;  %v670_v34 = vmul.f32 %v1230_v40, %v628_v38 }
 0x1df   : > { %704 = vst [vmem:[%s1237_s26 + $0x78] sm:$0xff] %v688_v39 }
 0x1e0   : > { %v686_v41 = vsel %vm653_vm1, %v628_v38, %v670_v34 }
 0x1e1   : > { %702 = vst [vmem:[%s1237_s26 + $0x68] sm:$0xff] %v686_v41 }
 0x1e2   : > { %975 = shalt.err (!%p972_p2)
}
 0x1e3   : > { %s976_s16 = scalar_lea.hbm %s1285_s11, 2048  ;;  %s980_s19 = scalar_lea.hbm %s1339_s6, 4096 }
 0x1e4   : > { %p977_p3 = scmp.ne.s32.totalorder %s1285_s11, %s976_s16  ;;  %p981_p8 = scmp.lt.s32.totalorder %s1285_s11, %s1339_s6 }
 0x1e5   : > { %p982_p11 = scmp.lt.s32.totalorder %s980_s19, %s976_s16 }
 0x1e6   : > { %p978_p4 = pnand %p977_p3, %p1105_p5 }
 0x1e7   : > { %p983_p9 = por %p982_p11, %p981_p8 }
 0x1e8   : > { %p979_p7 = pneg %p978_p4 }
 0x1ea   : > { %p984_p10 = pnand %p983_p9, %p979_p7 }
 0x1ec   : > { %987 = shalt.err (!%p984_p10)
}
 0x1ed   : > { %s1030_s28 = smov 128   ;;  %s1031_s9 = smov 8  }
 0x1ee   : > { %895 = dma.vmem_to_hbm [thread:$0]  (%p1105_p5), %s1287_s29, 2048, %s1285_s11, %s1293_s25, %s1030_s28, %s1030_s28, %s1031_s9  }
 0x1ef PF: > { %p907_p12 = scmp.ge.s32.totalorder %s1026_s24, 2  ;;  %s734_s10 = sand.u32 1, %s1014_s21  }
 0x1f0   : > { %s735_s12 = scalar_lea.sflag [#allocation3], %s734_s10 }
 0x1f1   : > { %p902_p13 = pnand %p907_p12, %p1109_p6 }
 0x1f3   : > { %p903_p0 = pneg %p902_p13 }
 0x1f5   : > { %1009 = dma.done.wait (%p903_p0), %s735_s12, 2048  }
 0x1f6   : > { %1011 = vsyncadd (%p903_p0), %s735_s12, 4294965248  ;;  %p17_p1 = scmp.ge.s32.totalorder %s1092_s27, 4   ;;  %s1343_s21 = smov %s1018_s22 }
 0x1f7   : > { %s1344_s22 = smov %s1022_s23  ;;  %s1345_s23 = smov %s1103_s30 }
 0x1f8   : > { %s1346_s24 = smov %s1092_s27  ;;  %19 = sbr.rel (!%p17_p1) target bundleno = 4 (0x4), region = 84 }
 0x1fd   :  { %740 = vsyncpa [#allocation3], 1 }
 0x1fe   :  { %742 = vsyncpa [#allocation3 + $0x1], 1 }
 0x1ff   :  { %743 = vsyncpa [#allocation4], 1 }
 0x200   :  { %745 = vsyncpa [#allocation4 + $0x1], 1 }

</bundles_post_ra>
